<compile_context>
chip_gen: v7x
topology: tpu7x:2x2x1
jax: 0.10.0
libtpu: 0.0.40
codegen_flags: <defaults>
</compile_context>

<pallas_src>
import functools

import jax
import jax.numpy as jnp
from jax.experimental import pallas as pl
from jax.experimental.pallas import tpu as pltpu


def _contrastive_kernel(x0_ref, x1_ref, w_ref, o_ref, *, margin, batch, tile_b):
    """One grid step: reduce a (tile_b, D) slab of row pairs to a scalar partial."""
    i = pl.program_id(0)

    x0 = x0_ref[...].astype(jnp.float32)            # (tile_b, D)
    x1 = x1_ref[...].astype(jnp.float32)

    eps = jnp.float32(1e-8)                         # torch cosine_similarity eps
    dot = jnp.sum(x0 * x1, axis=1, keepdims=True)   # (tile_b, 1)
    s0 = jnp.sum(x0 * x0, axis=1, keepdims=True)
    s1 = jnp.sum(x1 * x1, axis=1, keepdims=True)
    # rsqrt on squared norms (EUP) == 1 / max(||x||, eps) since sqrt is monotone.
    inv_n0 = jax.lax.rsqrt(jnp.maximum(s0, eps * eps))
    inv_n1 = jax.lax.rsqrt(jnp.maximum(s1, eps * eps))
    cos = dot * inv_n0 * inv_n1

    dist = 1.0 - cos                                # cosine distance
    clamped = jnp.maximum(jnp.float32(margin) - dist, 0.0)

    w = w_ref[...]                                  # (tile_b, 2) f32: [y*w, (1-y)*w]
    loss = w[:, 0:1] * (dist * dist) + w[:, 1:2] * (clamped * clamped)

    # The last block may overrun the array (no wrapper-side padding): rows past
    # `batch` hold undefined VMEM data, so mask with a select (NOT a multiply
    # -- undefined data may be NaN and NaN * 0 == NaN).
    row_id = i * tile_b + jax.lax.broadcasted_iota(jnp.int32, (tile_b, 1), 0)
    loss = jnp.where(row_id < batch, loss, 0.0)

    # Lane-dense, unmasked (8,128) store of this tile's partial sum.
    o_ref[...] = jnp.full((8, 128), jnp.sum(loss), dtype=jnp.float32)


def _vmem_capacity_bytes():
    try:
        return int(pltpu.get_tpu_info().vmem_capacity_bytes)
    except Exception:                               # pragma: no cover
        return 64 * 1024 * 1024                     # conservative (v7x-sized) fallback


def contrastive_loss(x0, x1, y0, y1, *, margin=1.0, weight=1.0, tile_b=None):
    """Pallas TPU implementation of ContrastiveLoss(reduction='mean')."""
    B, D = x0.shape
    itemsize = jnp.dtype(x0.dtype).itemsize
    b_pad8 = pl.cdiv(B, 8) * 8

    # Generation-aware VMEM limit: ~75% of physical VMEM (96 MiB on v5e/v6e's
    # 128 MiB, 48 MiB on v7x's 64 MiB), never above 100 MiB.
    vmem_limit = min((_vmem_capacity_bytes() * 3) // 4, 100 * 1024 * 1024)

    if tile_b is None:
        # Per-row VMEM footprint:
        #   * x0 + x1 input tiles, double-buffered by the BlockSpec pipeline
        #   * ~4x D f32 for the in-kernel upcast / product intermediates
        #   * the (tile_b, 2) f32 weight block inflates to 128 lanes in VMEM
        per_row = (2 * 2 * D * itemsize) + (4 * D * 4) + (2 * 128 * 4)
        budget = int(0.65 * vmem_limit)             # headroom for pipelining/output
        tile_b = max(8, min(32768, (budget // per_row) // 8 * 8))
        # Keep at least two grid steps so both v7x TensorCores get work
        # (one extra ~0.35 us step is noise on single-core generations).
        if B > 8:
            tile_b = min(tile_b, max(8, (((B + 1) // 2) + 7) // 8 * 8))
    else:
        tile_b = max(8, (int(tile_b) // 8) * 8)
    tile_b = min(tile_b, b_pad8)

    num_tiles = pl.cdiv(B, tile_b)

    # Precompute per-row loss weights [y*w, (1-y)*w] in f32 (tiny array; the big
    # (B, D) inputs are streamed unpadded -- no wrapper-side jnp.pad HBM copy).
    y0f = y0.reshape(B).astype(jnp.int32)
    y1f = y1.reshape(B).astype(jnp.int32)
    y = (y0f == y1f).astype(jnp.float32)
    w = (jnp.float32(weight) - 1.0) * jnp.logical_and(
        y0f == 1, y1f == 1).astype(jnp.float32) + 1.0
    wpair = jnp.stack([y * w, (1.0 - y) * w], axis=1)   # (B, 2) f32

    kernel = functools.partial(
        _contrastive_kernel, margin=float(margin), batch=B, tile_b=tile_b)

    cost = pl.CostEstimate(
        flops=6 * B * D,
        transcendentals=2 * B,
        bytes_accessed=2 * B * D * itemsize + B * 2 * 4 + num_tiles * 8 * 128 * 4)

    partials = pl.pallas_call(
        kernel,
        out_shape=jax.ShapeDtypeStruct((num_tiles * 8, 128), jnp.float32),
        grid=(num_tiles,),
        in_specs=[
            pl.BlockSpec((tile_b, D), lambda i: (i, 0)),
            pl.BlockSpec((tile_b, D), lambda i: (i, 0)),
            pl.BlockSpec((tile_b, 2), lambda i: (i, 0)),
        ],
        out_specs=pl.BlockSpec((8, 128), lambda i: (i, 0)),
        compiler_params=pltpu.CompilerParams(
            dimension_semantics=("parallel",),
            vmem_limit_bytes=int(vmem_limit),
        ),
        cost_estimate=cost,
    )(x0, x1, wpair)

    # Per-tile partial sums live (broadcast) in each (8,128) block; final reduce
    # and the 1/(2B) scale happen in the wrapper.
    tile_sums = partials.reshape(num_tiles, 8 * 128)[:, 0]
    return jnp.sum(tile_sums) * jnp.float32(1.0 / (2.0 * B))


def _reference(x0, x1, y0, y1, margin=1.0, weight=1.0):
    # Plain-JAX reference mirroring the PyTorch forward (reduction='mean').
    x0 = x0.astype(jnp.float32)
    x1 = x1.astype(jnp.float32)
    eps = 1e-8
    dot = jnp.sum(x0 * x1, axis=1)
    n0 = jnp.sqrt(jnp.sum(x0 * x0, axis=1))
    n1 = jnp.sqrt(jnp.sum(x1 * x1, axis=1))
    cos = dot / (jnp.maximum(n0, eps) * jnp.maximum(n1, eps))
    dist = 1.0 - cos
    dist_sq = dist ** 2
    clamped = jnp.maximum(margin - dist, 0.0)
    y = (y0 == y1).astype(jnp.float32)
    w = (weight - 1.0) * jnp.logical_and(y0 == 1, y1 == 1).astype(jnp.float32) + 1.0
    loss = y * dist_sq + (1.0 - y) * clamped ** 2
    return jnp.sum(loss * w) / 2.0 / x0.shape[0]


if __name__ == "__main__":
    key = jax.random.PRNGKey(0)
    k0, k1, k2, k3 = jax.random.split(key, 4)

    # Case 1: small batch, single tile, auto tile sizing.
    B, D = 8, 32
    x0 = jax.random.normal(k0, (B, D), dtype=jnp.float32)
    x1 = jax.random.normal(k1, (B, D), dtype=jnp.float32)
    y0 = jax.random.randint(k2, (B,), 0, 2, dtype=jnp.int32)
    y1 = jax.random.randint(k3, (B,), 0, 2, dtype=jnp.int32)

    loss = contrastive_loss(x0, x1, y0, y1, margin=1.0, weight=2.0)
    jax.block_until_ready(loss)
    ref = _reference(x0, x1, y0, y1, margin=1.0, weight=2.0)
    assert jnp.allclose(loss, ref, rtol=1e-5, atol=1e-5), (loss, ref)

    # Case 2: ragged batch, multiple tiles, explicit tile_b (exercises the
    # unpadded overrunning last block + in-kernel jnp.where tail mask + the
    # parallel grid axis + the partial-sum reduction path).
    B2, D2 = 20, 32
    x0b = jax.random.normal(k1, (B2, D2), dtype=jnp.float32)
    x1b = jax.random.normal(k2, (B2, D2), dtype=jnp.float32)
    y0b = jax.random.randint(k0, (B2,), 0, 2, dtype=jnp.int32)
    y1b = jax.random.randint(k3, (B2,), 0, 2, dtype=jnp.int32)

    loss2 = contrastive_loss(x0b, x1b, y0b, y1b, margin=1.5, weight=3.0, tile_b=8)
    jax.block_until_ready(loss2)
    ref2 = _reference(x0b, x1b, y0b, y1b, margin=1.5, weight=3.0)
    assert jnp.allclose(loss2, ref2, rtol=1e-5, atol=1e-5), (loss2, ref2)

    # Case 3: bf16 inputs through the auto heuristic (two-tile megacore split).
    B3, D3 = 24, 64
    x0c = jax.random.normal(k3, (B3, D3), dtype=jnp.bfloat16)
    x1c = jax.random.normal(k2, (B3, D3), dtype=jnp.bfloat16)
    y0c = jax.random.randint(k0, (B3,), 0, 2, dtype=jnp.int32)
    y1c = jax.random.randint(k1, (B3,), 0, 2, dtype=jnp.int32)

    loss3 = contrastive_loss(x0c, x1c, y0c, y1c, margin=1.0, weight=2.0)
    jax.block_until_ready(loss3)
    ref3 = _reference(x0c, x1c, y0c, y1c, margin=1.0, weight=2.0)
    assert jnp.allclose(loss3, ref3, rtol=1e-4, atol=1e-4), (loss3, ref3)

    print("KERNEL_OK")
</pallas_src>

<mosaic_0001>
module attributes {stable_mosaic.version = 11 : i64} {
  func.func @_contrastive_kernel(%arg0: i32, %arg1: memref<8x32xf32, #tpu.memory_space<vmem>>, %arg2: memref<8x32xf32, #tpu.memory_space<vmem>>, %arg3: memref<8x2xf32, #tpu.memory_space<vmem>>, %arg4: memref<8x128xf32, #tpu.memory_space<vmem>>) attributes {dimension_semantics = [#tpu.dimension_semantics<parallel>], iteration_bounds = array<i64: 1>, scalar_prefetch = 0 : i64, scratch_operands = 0 : i64, tpu.core_type = #tpu.core_type<tc>, window_params = [{transform_indices = @transform_0, window_bounds = array<i64: 8, 32>}, {transform_indices = @transform_1, window_bounds = array<i64: 8, 32>}, {transform_indices = @transform_2, window_bounds = array<i64: 8, 2>}, {transform_indices = @transform_3, window_bounds = array<i64: 8, 128>}]} {
    %c0 = arith.constant 0 : index
    %c0_0 = arith.constant 0 : index
    %0 = vector.load %arg1[%c0, %c0_0] : memref<8x32xf32, #tpu.memory_space<vmem>>, vector<8x32xf32>
    %c0_1 = arith.constant 0 : index
    %c0_2 = arith.constant 0 : index
    %1 = vector.load %arg2[%c0_1, %c0_2] : memref<8x32xf32, #tpu.memory_space<vmem>>, vector<8x32xf32>
    %2 = arith.mulf %0, %1 : vector<8x32xf32>
    %cst = arith.constant dense<0.000000e+00> : vector<8xf32>
    %3 = vector.multi_reduction <add>, %2, %cst [1] : vector<8x32xf32> to vector<8xf32>
    %4 = vector.shape_cast %3 : vector<8xf32> to vector<8x1xf32>
    %5 = arith.mulf %0, %0 : vector<8x32xf32>
    %cst_3 = arith.constant dense<0.000000e+00> : vector<8xf32>
    %6 = vector.multi_reduction <add>, %5, %cst_3 [1] : vector<8x32xf32> to vector<8xf32>
    %7 = vector.shape_cast %6 : vector<8xf32> to vector<8x1xf32>
    %8 = arith.mulf %1, %1 : vector<8x32xf32>
    %cst_4 = arith.constant dense<0.000000e+00> : vector<8xf32>
    %9 = vector.multi_reduction <add>, %8, %cst_4 [1] : vector<8x32xf32> to vector<8xf32>
    %10 = vector.shape_cast %9 : vector<8xf32> to vector<8x1xf32>
    %cst_5 = arith.constant 9.99999993E-9 : f32
    %cst_6 = arith.constant 9.99999993E-9 : f32
    %11 = arith.mulf %cst_5, %cst_6 : f32
    %12 = vector.broadcast %11 : f32 to vector<8x1xf32>
    %13 = arith.maximumf %7, %12 : vector<8x1xf32>
    %14 = math.rsqrt %13 : vector<8x1xf32>
    %cst_7 = arith.constant 9.99999993E-9 : f32
    %cst_8 = arith.constant 9.99999993E-9 : f32
    %15 = arith.mulf %cst_7, %cst_8 : f32
    %16 = vector.broadcast %15 : f32 to vector<8x1xf32>
    %17 = arith.maximumf %10, %16 : vector<8x1xf32>
    %18 = math.rsqrt %17 : vector<8x1xf32>
    %19 = arith.mulf %4, %14 : vector<8x1xf32>
    %20 = arith.mulf %19, %18 : vector<8x1xf32>
    %cst_9 = arith.constant 1.000000e+00 : f32
    %21 = vector.broadcast %cst_9 : f32 to vector<8x1xf32>
    %22 = arith.subf %21, %20 : vector<8x1xf32>
    %cst_10 = arith.constant 1.000000e+00 : f32
    %23 = vector.broadcast %cst_10 : f32 to vector<8x1xf32>
    %24 = arith.subf %23, %22 : vector<8x1xf32>
    %cst_11 = arith.constant 0.000000e+00 : f32
    %25 = vector.broadcast %cst_11 : f32 to vector<8x1xf32>
    %26 = arith.maximumf %24, %25 : vector<8x1xf32>
    %c0_12 = arith.constant 0 : index
    %c0_13 = arith.constant 0 : index
    %27 = vector.load %arg3[%c0_12, %c0_13] : memref<8x2xf32, #tpu.memory_space<vmem>>, vector<8x2xf32>
    %28 = vector.extract_strided_slice %27 {offsets = [0, 0], sizes = [8, 1], strides = [1, 1]} : vector<8x2xf32> to vector<8x1xf32>
    %29 = arith.mulf %22, %22 : vector<8x1xf32>
    %30 = arith.mulf %28, %29 : vector<8x1xf32>
    %31 = vector.extract_strided_slice %27 {offsets = [0, 1], sizes = [8, 1], strides = [1, 1]} : vector<8x2xf32> to vector<8x1xf32>
    %32 = arith.mulf %26, %26 : vector<8x1xf32>
    %33 = arith.mulf %31, %32 : vector<8x1xf32>
    %34 = arith.addf %30, %33 : vector<8x1xf32>
    %c8_i32 = arith.constant 8 : i32
    %35 = arith.muli %arg0, %c8_i32 : i32
    %36 = tpu.iota {dimensions = array<i32: 0>} : vector<8x1xi32>
    %37 = vector.broadcast %35 : i32 to vector<8x1xi32>
    %38 = arith.addi %37, %36 : vector<8x1xi32>
    %c8_i32_14 = arith.constant 8 : i32
    %39 = vector.broadcast %c8_i32_14 : i32 to vector<8x1xi32>
    %40 = arith.cmpi slt, %38, %39 : vector<8x1xi32>
    %cst_15 = arith.constant 0.000000e+00 : f32
    %41 = vector.broadcast %cst_15 : f32 to vector<8x1xf32>
    %42 = arith.select %40, %34, %41 : vector<8x1xi1>, vector<8x1xf32>
    %43 = vector.shape_cast %42 : vector<8x1xf32> to vector<1x8x1xf32>
    %cst_16 = arith.constant dense<0.000000e+00> : vector<1xf32>
    %44 = vector.multi_reduction <add>, %43, %cst_16 [1, 2] : vector<1x8x1xf32> to vector<1xf32>
    %45 = vector.shape_cast %44 : vector<1xf32> to vector<1x1x1xf32>
    %46 = vector.extract %45[0, 0, 0] : f32 from vector<1x1x1xf32>
    %47 = vector.broadcast %46 : f32 to vector<8x128xf32>
    %c0_17 = arith.constant 0 : index
    %c0_18 = arith.constant 0 : index
    %48 = vector.load %arg4[%c0_17, %c0_18] : memref<8x128xf32, #tpu.memory_space<vmem>>, vector<8x128xf32>
    tpu.vector_store %arg4[%c0_17, %c0_18], %47 {strides = array<i32>} : memref<8x128xf32, #tpu.memory_space<vmem>>, vector<8x128xf32>,
    return
  }
  func.func @transform_0(%arg0: i32) -> (i32, i32) {
    %c0_i32 = arith.constant 0 : i32
    %c0_i32_0 = arith.constant 0 : i32
    return %arg0, %c0_i32 : i32, i32
  }
  func.func @transform_1(%arg0: i32) -> (i32, i32) {
    %c0_i32 = arith.constant 0 : i32
    %c0_i32_0 = arith.constant 0 : i32
    return %arg0, %c0_i32 : i32, i32
  }
  func.func @transform_2(%arg0: i32) -> (i32, i32) {
    %c0_i32 = arith.constant 0 : i32
    %c0_i32_0 = arith.constant 0 : i32
    return %arg0, %c0_i32 : i32, i32
  }
  func.func @transform_3(%arg0: i32) -> (i32, i32) {
    %c0_i32 = arith.constant 0 : i32
    %c0_i32_0 = arith.constant 0 : i32
    return %arg0, %c0_i32 : i32, i32
  }
}

</mosaic_0001>

<bundles_post_ra>
// kernel: tpu_custom_call.1
= control target key start
LH: loop header
LB: loop body
LE: loop exit
PB: predicated region body
PF: predicated region fallthrough
CT: control target
= control target key end

     0   :  { %8 = vsyncpa [#allocation3], 0  ;;  %s206_s0 = inlined_call_operand.vmem [shape: f32[8,32], index: 0, kind: input, shape index: {}]   ;;  %s207_s1 = inlined_call_operand.hbm [shape: f32[8,32], index: 1, kind: input, shape index: {}]   ;;  %s208_s2 = inlined_call_operand.vmem [shape: f32[8,2], index: 2, kind: input, shape index: {}]   ;;  %s209_s3 = inlined_call_operand.hbm [shape: f32[8,128], index: 3, kind: output, shape index: {}]  }
   0x1   :  { %9 = vsyncpa [#allocation4], 0  ;;  %s153_s12 = smov [#allocation2]   ;;  %s105_s16 = scalar_lea.hbm %s207_s1, 128 }
   0x2   :  { %s18_s13 = sshll.u32 %s153_s12, 4  ;;  %p106_p0 = scmp.ne.s32.totalorder %s207_s1, %s105_s16  ;;  %s19_s13 = int_to_ptr.vmem [resolvable:$true] %s18_s13 }
   0x3   :  { %p109_p1 = scmp.lt.u32.totalorder %s105_s16, %s207_s1 }
   0x5   :  { %p111_p2 = pnand %p109_p1, %p106_p0 }
   0x7   :  { %114 = shalt.err (!%p111_p2)
}
   0x8   :  { %s115_s21 = scalar_lea.vmem %s19_s13, 128  ;;  %p120_p4 = scmp.lt.s32.totalorder %s19_s13, %s19_s13 }
   0x9   :  { %p116_p3 = scmp.ne.s32.totalorder %s19_s13, %s115_s21  ;;  %p121_p5 = scmp.lt.s32.totalorder %s115_s21, %s115_s21 }
   0xb   :  { %p122_p6 = por %p121_p5, %p120_p4 }
   0xd   :  { %p123_p7 = pnand %p122_p6, %p116_p3 }
   0xf   :  { %126 = shalt.err (!%p123_p7)
}
  0x10   :  { %21 = dma.hbm_to_vmem [thread:$0]  %s207_s1, 128, %s19_s13, [#allocation3]  }
  0x11   :  { %149 = dma.done.wait [#allocation3], 128  }
  0x12   :  { %150 = vsyncadd [#allocation3], 4294967168  ;;  %v27_v0 = vld [vmem:[%s206_s0] sm:$0xff]  ;;  %vm30_vm0 = vcmask 261120   ;;  %s154_s26 = smov 127   ;;  %vm68_vm1 = vcmask 7168  }
  0x13   :  { %v28_v1 = vld [vmem:[#allocation2] sm:$0xff]  ;;  %v34_v2 = vmul.f32 %v27_v0, %v27_v0 }
  0x14   :  { %v38_v3 = vmul.f32 %v28_v1, %v28_v1  ;;  %v29_v4 = vmul.f32 %v28_v1, %v27_v0  ;;  %v51_v18 = vld [vmem:[%s208_s2] sm:$0xff]  ;;  %s155_s2 = smov [#allocation5]  }
  0x15   :  { %v35_v5 = vsel %vm30_vm0, %v34_v2, 0.0  ;;  %s87_s27 = sshll.u32 %s155_s2, 4  ;;  %s88_s27 = int_to_ptr.vmem [resolvable:$true] %s87_s27 }
  0x16   :  { %v31_v6 = vsel %vm30_vm0, %v29_v4, 0.0  ;;  %36 = vadd.xlane.f32.xlu0 %v35_v5  ;;  %v39_v7 = vsel %vm30_vm0, %v38_v3, 0.0  ;;  %s127_s29 = scalar_lea.vmem %s88_s27, 128  ;;  %p132_p9 = scmp.lt.s32.totalorder %s88_s27, %s88_s27 }
  0x17   :  { %32 = vadd.xlane.f32.xlu1 %v31_v6  ;;  %p128_p8 = scmp.ne.s32.totalorder %s88_s27, %s127_s29  ;;  %p133_p10 = scmp.lt.s32.totalorder %s127_s29, %s127_s29 }
  0x19   :  { %p134_p11 = por %p133_p10, %p132_p9 }
  0x1a   :  { %40 = vadd.xlane.f32.xlu0 %v39_v7 }
  0x1b   :  { %p135_p12 = pnand %p134_p11, %p128_p8 }
  0xa3   :  { %v37_v8 = vpop.xlane.xlu0 %36 }
  0xa4   :  { %v42_v9 = vmax.f32 %v37_v8, 1e-16  ;;  %v33_v13 = vpop.xlane.xlu1 %32 }
  0xa6   :  { %101 = vrsqrt.f32 %v42_v9 }
  0xa7   :  { %v41_v10 = vpop.xlane.xlu0 %40 }
  0xa8   :  { %v44_v11 = vmax.f32 %v41_v10, 1e-16 }
  0xaa   :  { %103 = vrsqrt.f32 %v44_v11 }
  0xb0   :  { %v102_v12 = vpop.eup %101 }
  0xb1   :  { %v46_v14 = vmul.f32 %v102_v12, %v33_v13 }
  0xb4   :  { %v104_v15 = vpop.eup %103 }
  0xb5   :  { %v47_v16 = vmul.f32 %v104_v15, %v46_v14 }
  0xb7   :  { %v48_v17 = vsub.f32 1.0, %v47_v16 }
  0xb9   :  { %v49_v19 = vsub.f32 1.0, %v48_v17  ;;  %v52_v20 = vmul.f32 %v48_v17, %v48_v17 }
  0xbb   :  { %v50_v21 = vmax.f32 %v49_v19, 0.0  ;;  %v53_v22 = vmul.f32 %v52_v20, %v51_v18 }
  0xbd   :  { %v54_v23 = vmul.f32 %v50_v21, %v50_v21 }
  0xbf   :  { %v55_v24 = vmul.f32 %v54_v23, %v51_v18 }
  0xc1   :  { %57 = vrot.lane.b32.xlu1 %v55_v24, %s154_s26 }
 0x133   :  { %v58_v25 = vpop.permute.xlu1 %57 }
 0x134   :  { %v60_v26 = vadd.f32 %v58_v25, %v53_v22 }
 0x136   :  { %v69_v27 = vsel %vm68_vm1, %v60_v26, 0.0 }
 0x137   :  { %70 = vadd.xlane.f32.xlu0 %v69_v27 }
 0x1c4   :  { %v71_v28 = vpop.xlane.xlu0 %70 }
 0x1c5   :  { %v72_v29 = vrot.slane %v71_v28, 4 }
 0x1c7   :  { %v73_v30 = vadd.f32 %v72_v29, %v71_v28 }
 0x1c9   :  { %v74_v31 = vrot.slane %v73_v30, 2 }
 0x1cb   :  { %v75_v32 = vadd.f32 %v74_v31, %v73_v30 }
 0x1cd   :  { %v76_v33 = vrot.slane %v75_v32, 1 }
 0x1cf   :  { %v77_v34 = vadd.f32 %v76_v33, %v75_v32 }
 0x1d1   :  { %96 = vpush %v77_v34 }
 0x202   :  { %s97_s28 = spop %96 }
 0x203   :  { %v79_v35 = vstv %s97_s28 }
 0x204   :  { %80 = vst [vmem:[#allocation5] sm:$0xff] %v79_v35 }
 0x205   :  { %138 = shalt.err (!%p135_p12)
}
 0x206   :  { %s139_s5 = scalar_lea.hbm %s209_s3, 128 }
 0x207   :  { %p140_p13 = scmp.ne.s32.totalorder %s209_s3, %s139_s5  ;;  %p143_p0 = scmp.lt.u32.totalorder %s139_s5, %s209_s3 }
 0x209   :  { %p145_p1 = pnand %p143_p0, %p140_p13 }
 0x20b   :  { %148 = shalt.err (!%p145_p1)
}
 0x20c   :  { %90 = dma.vmem_to_hbm [thread:$0]  %s88_s27, 128, %s209_s3, [#allocation4]  }
 0x20d   :  { %151 = dma.done.wait [#allocation4], 128  }
 0x20e   :  { %152 = vsyncadd [#allocation4], 4294967168 }
 0x20f   :  { %94 = vsyncpa [#allocation3], 1 }
 0x210   :  { %95 = vsyncpa [#allocation4], 1 }

</bundles_post_ra>
